<compile_context>
chip_gen: v7x
topology: tpu7x:2x2x1
jax: 0.10.0
libtpu: 0.0.40
codegen_flags: <defaults>
</compile_context>

<pallas_src>
import numpy as np
import jax
import jax.numpy as jnp
from jax.experimental import pallas as pl
from jax.experimental.pallas import tpu as pltpu

# ----------------------------- configuration --------------------------------
B = 2            # batch size
IMGS_PER = 2     # images per batch element  (images.size(0) = B * IMGS_PER)
IMG_SIZE = 16    # small stand-in for 224
IN_CH = 3
PATCH = 4        # patch-embed conv: kernel 4, stride 4
GRID = IMG_SIZE // PATCH           # 4
HW = GRID * GRID                   # 16   (stand-in for 49)
FEAT_C = 128                       # feature channels (stand-in for 2048)
HIDDEN = 32                        # args.hidden_size
VOCAB = 255                        # args.vocab_size
VP1 = VOCAB + 1                    # mlp output dim (256, lane dense)
STEPS = 8                          # captions.size(1)
N_IMG = B * IMGS_PER
PATCH_DIM = IN_CH * PATCH * PATCH  # 48
K_PAD = 128                        # padded contraction dim (lane dense)
ROWS_IMG = N_IMG * HW              # 64
AGG_ROWS = B * HW + B              # 34  (V rows + v_g rows)
AGG_ROWS_PAD = ((AGG_ROWS + 7) // 8) * 8   # 40 (sublane multiple)

# Static 0/1 aggregation structure (which image-rows feed which output row).
# Dynamic per-batch scaling (1/img_num, 1/(img_num*HW)) is applied on the host.
_S_NP = np.zeros((AGG_ROWS_PAD, ROWS_IMG), np.float32)
for _b in range(B):
    for _im in range(IMGS_PER):
        _base = (_b * IMGS_PER + _im) * HW
        for _p in range(HW):
            _S_NP[_b * HW + _p, _base + _p] = 1.0      # V row (b, p)
            _S_NP[B * HW + _b, _base + _p] = 1.0       # v_g row b


# ----------------------------- fused kernel ----------------------------------
def _fused_forward_kernel(patch_ref, wconv_ref, agg_ref, bmlp_ref, clsw_ref,
                          v_ref, vg_ref, loss_ref):
    # patch_ref: (ROWS_IMG, K_PAD)        VMEM   (zero-padded patches)
    # wconv_ref: (K_PAD, FEAT_C)          VMEM   (zero-padded conv weight)
    # agg_ref  : (AGG_ROWS_PAD, ROWS_IMG) VMEM   (scaled aggregation matrix)
    # bmlp_ref : (1, VP1)                 VMEM   (mlp bias == logits row)
    # clsw_ref : (1, VP1)                 VMEM   (per-class counts / n_valid)
    # v_ref    : (B*HW, FEAT_C)           VMEM
    # vg_ref   : (B, FEAT_C)              VMEM
    # loss_ref : (1, 1)                   SMEM

    # ---- 1. patch-embed conv (resnet_conv stand-in): conv-as-matmul + ReLU --
    feats = jnp.maximum(
        jnp.dot(patch_ref[...], wconv_ref[...],
                preferred_element_type=jnp.float32), 0.0)      # (ROWS_IMG, C)

    # ---- 2. per-batch aggregation + avgpool as ONE MXU matmul ---------------
    # rows [0, B*HW)        -> V[b, p, :]  = sum_im feats / img_num[b]
    # rows [B*HW, B*HW+B)   -> v_g[b, :]   = sum_{im,p} feats / (img_num[b]*HW)
    res = jnp.dot(agg_ref[...], feats,
                  preferred_element_type=jnp.float32)          # (40, FEAT_C)
    v_ref[...] = res[:B * HW]
    vg_ref[...] = res[B * HW:B * HW + B]

    # ---- 3. loss epilogue ----------------------------------------------------
    # TODO(synk): self.core is undefined, cs keeps its PyTorch init (zeros),
    # so logits == b_mlp broadcast to every packed token.  log_softmax on the
    # single bias row, then masked-mean NLL collapses to a dot with the
    # host-precomputed per-class weight vector (counts / n_valid).
    b = bmlp_ref[...]                                          # (1, VP1)
    m = jnp.max(b, axis=-1, keepdims=True)
    lse = jnp.log(jnp.sum(jnp.exp(b - m), axis=-1, keepdims=True)) + m
    logp = b - lse                                             # log_softmax
    loss_ref[0, 0] = -jnp.sum(logp * clsw_ref[...])


# ------------------------------ forward pass ---------------------------------
def extract_patches(images):
    # images: (N_IMG, IN_CH, IMG_SIZE, IMG_SIZE)  NCHW, as in PyTorch.
    # TODO(synk): at real 224x224 scale fold this layout shuffle into the
    #             kernel's input BlockSpec / DMA instead of a host transpose.
    x = images.reshape(N_IMG, IN_CH, GRID, PATCH, GRID, PATCH)
    x = jnp.transpose(x, (0, 2, 4, 1, 3, 5))          # (N, gh, gw, C, ph, pw)
    p = x.reshape(ROWS_IMG, PATCH_DIM)
    return jnp.pad(p, ((0, 0), (0, K_PAD - PATCH_DIM)))   # lane-dense K


@jax.jit
def basic_model_forward(images, img_num, captions, lengths, w_conv, w_mlp, b_mlp):
    # --- host-side (cheap, XLA-fused) data prep ------------------------------
    del w_mlp  # contributes exactly zero (cs == 0); see TODO in the kernel.
    patches = extract_patches(images)                          # (64, 128)
    w_conv_pad = jnp.pad(w_conv, ((0, K_PAD - PATCH_DIM), (0, 0)))

    # aggregation matrix: static structure * dynamic per-row scale
    inv = 1.0 / img_num.astype(jnp.float32)                    # (B,)
    row_scale = jnp.concatenate([
        jnp.repeat(inv, HW),                                   # V rows
        inv * (1.0 / HW),                                      # v_g rows
        jnp.zeros((AGG_ROWS_PAD - AGG_ROWS,), jnp.float32),    # pad rows
    ])
    agg = jnp.asarray(_S_NP) * row_scale[:, None]              # (40, 64)

    # pack_padded_sequence replacement: per-class weight vector.
    # pack_padded_sequence(captions[:, 1:], lengths) requires lengths<=STEPS-1.
    eff_len = jnp.minimum(lengths, STEPS - 1)
    t_idx = jnp.arange(STEPS)[None, :]                         # (1, STEPS)
    mask = (t_idx < eff_len[:, None]).astype(jnp.float32)      # (B, STEPS)
    shifted = jnp.concatenate(
        [captions[:, 1:], jnp.ones((B, 1), captions.dtype)], axis=1)
    tgt = jnp.clip(shifted - 1, 0, VP1 - 1).astype(jnp.int32)  # targets - 1
    onehot = jax.nn.one_hot(tgt, VP1, dtype=jnp.float32) * mask[..., None]
    counts = jnp.sum(onehot, axis=(0, 1))                      # (VP1,)
    n_valid = jnp.maximum(jnp.sum(mask), 1.0)                  # #packed tokens
    cls_w = (counts / n_valid).reshape(1, VP1)

    # --- single fused, fully VMEM-resident Pallas kernel (no grid) -----------
    v_flat, v_g, loss = pl.pallas_call(
        _fused_forward_kernel,
        out_shape=(
            jax.ShapeDtypeStruct((B * HW, FEAT_C), jnp.float32),
            jax.ShapeDtypeStruct((B, FEAT_C), jnp.float32),
            jax.ShapeDtypeStruct((1, 1), jnp.float32),
        ),
        in_specs=[
            pl.BlockSpec(memory_space=pltpu.MemorySpace.VMEM),   # patches
            pl.BlockSpec(memory_space=pltpu.MemorySpace.VMEM),   # w_conv
            pl.BlockSpec(memory_space=pltpu.MemorySpace.VMEM),   # agg
            pl.BlockSpec(memory_space=pltpu.MemorySpace.VMEM),   # b_mlp
            pl.BlockSpec(memory_space=pltpu.MemorySpace.VMEM),   # cls_w
        ],
        out_specs=[
            pl.BlockSpec(memory_space=pltpu.MemorySpace.VMEM),   # V (flat)
            pl.BlockSpec(memory_space=pltpu.MemorySpace.VMEM),   # v_g
            pl.BlockSpec(memory_space=pltpu.MemorySpace.SMEM),   # loss scalar
        ],
    )(patches, w_conv_pad, agg, b_mlp, cls_w)

    V = v_flat.reshape(B, HW, FEAT_C)
    return loss[0, 0], V, v_g


if __name__ == "__main__":
    key = jax.random.PRNGKey(0)
    k_img, k_cap, k_conv, k_mlp = jax.random.split(key, 4)

    images = jax.random.normal(
        k_img, (N_IMG, IN_CH, IMG_SIZE, IMG_SIZE), jnp.float32)
    img_num = jnp.array([IMGS_PER, IMGS_PER], jnp.int32)
    captions = jax.random.randint(
        k_cap, (B, STEPS), minval=1, maxval=VOCAB + 1, dtype=jnp.int32)
    lengths = jnp.array([7, 5], jnp.int32)   # sorted descending, <= STEPS-1

    # deterministic parameters
    w_conv = 0.05 * jax.random.normal(k_conv, (PATCH_DIM, FEAT_C), jnp.float32)
    # mlp: bias = 0, weight ~ U(-0.1, 0.1)   (matches init_weights)
    w_mlp = jax.random.uniform(
        k_mlp, (HIDDEN, VP1), jnp.float32, minval=-0.1, maxval=0.1)
    b_mlp = jnp.zeros((1, VP1), jnp.float32)

    loss, V, v_g = basic_model_forward(
        images, img_num, captions, lengths, w_conv, w_mlp, b_mlp)
    jax.block_until_ready((loss, V, v_g))

    assert loss.shape == ()
    assert V.shape == (B, HW, FEAT_C)
    assert v_g.shape == (B, FEAT_C)
    assert bool(jnp.isfinite(loss))
    assert bool(jnp.all(jnp.isfinite(V))) and bool(jnp.all(jnp.isfinite(v_g)))
    print("KERNEL_OK")
</pallas_src>

<mosaic_0001>
module attributes {stable_mosaic.version = 11 : i64} {
  func.func @_fused_forward_kernel(%arg0: memref<64x128xf32, #tpu.memory_space<vmem>>, %arg1: memref<128x128xf32, #tpu.memory_space<vmem>>, %arg2: memref<40x64xf32, #tpu.memory_space<vmem>>, %arg3: memref<1x256xf32, #tpu.memory_space<vmem>>, %arg4: memref<1x256xf32, #tpu.memory_space<vmem>>, %arg5: memref<32x128xf32, #tpu.memory_space<vmem>>, %arg6: memref<2x128xf32, #tpu.memory_space<vmem>>, %arg7: memref<1x1xf32, #tpu.memory_space<smem>>) attributes {dimension_semantics = [], scalar_prefetch = 0 : i64, scratch_operands = 0 : i64, tpu.core_type = #tpu.core_type<tc>} {
    %c0 = arith.constant 0 : index
    %c0_0 = arith.constant 0 : index
    %0 = vector.load %arg0[%c0, %c0_0] : memref<64x128xf32, #tpu.memory_space<vmem>>, vector<64x128xf32>
    %c0_1 = arith.constant 0 : index
    %c0_2 = arith.constant 0 : index
    %1 = vector.load %arg1[%c0_1, %c0_2] : memref<128x128xf32, #tpu.memory_space<vmem>>, vector<128x128xf32>
    %cst = arith.constant dense<0.000000e+00> : vector<64x128xf32>
    %2 = tpu.matmul %0, %1, %cst {dimension_numbers = #tpu.dot_dimension_numbers<[1], [0], [0], [1], [0, 0, 1, 1], [], []>} : vector<64x128xf32>, vector<128x128xf32>, vector<64x128xf32> -> vector<64x128xf32>
    %cst_3 = arith.constant 0.000000e+00 : f32
    %3 = vector.broadcast %cst_3 : f32 to vector<64x128xf32>
    %4 = arith.maximumf %2, %3 : vector<64x128xf32>
    %c0_4 = arith.constant 0 : index
    %c0_5 = arith.constant 0 : index
    %5 = vector.load %arg2[%c0_4, %c0_5] : memref<40x64xf32, #tpu.memory_space<vmem>>, vector<40x64xf32>
    %cst_6 = arith.constant dense<0.000000e+00> : vector<40x128xf32>
    %6 = tpu.matmul %5, %4, %cst_6 {dimension_numbers = #tpu.dot_dimension_numbers<[1], [0], [0], [1], [0, 0, 1, 1], [], []>} : vector<40x64xf32>, vector<64x128xf32>, vector<40x128xf32> -> vector<40x128xf32>
    %7 = vector.extract_strided_slice %6 {offsets = [0, 0], sizes = [32, 128], strides = [1, 1]} : vector<40x128xf32> to vector<32x128xf32>
    %c0_7 = arith.constant 0 : index
    %c0_8 = arith.constant 0 : index
    %8 = vector.load %arg5[%c0_7, %c0_8] : memref<32x128xf32, #tpu.memory_space<vmem>>, vector<32x128xf32>
    tpu.vector_store %arg5[%c0_7, %c0_8], %7 {strides = array<i32>} : memref<32x128xf32, #tpu.memory_space<vmem>>, vector<32x128xf32>,
    %9 = vector.extract_strided_slice %6 {offsets = [32, 0], sizes = [2, 128], strides = [1, 1]} : vector<40x128xf32> to vector<2x128xf32>
    %c0_9 = arith.constant 0 : index
    %c0_10 = arith.constant 0 : index
    %10 = vector.load %arg6[%c0_9, %c0_10] : memref<2x128xf32, #tpu.memory_space<vmem>>, vector<2x128xf32>
    tpu.vector_store %arg6[%c0_9, %c0_10], %9 {strides = array<i32>} : memref<2x128xf32, #tpu.memory_space<vmem>>, vector<2x128xf32>,
    %c0_11 = arith.constant 0 : index
    %c0_12 = arith.constant 0 : index
    %11 = vector.load %arg3[%c0_11, %c0_12] : memref<1x256xf32, #tpu.memory_space<vmem>>, vector<1x256xf32>
    %cst_13 = arith.constant dense<0xFF800000> : vector<1xf32>
    %12 = vector.multi_reduction <maximumf>, %11, %cst_13 [1] : vector<1x256xf32> to vector<1xf32>
    %13 = vector.shape_cast %12 : vector<1xf32> to vector<1x1xf32>
    %14 = vector.broadcast %13 : vector<1x1xf32> to vector<1x256xf32>
    %15 = arith.subf %11, %14 : vector<1x256xf32>
    %16 = math.exp %15 : vector<1x256xf32>
    %cst_14 = arith.constant dense<0.000000e+00> : vector<1xf32>
    %17 = vector.multi_reduction <add>, %16, %cst_14 [1] : vector<1x256xf32> to vector<1xf32>
    %18 = vector.shape_cast %17 : vector<1xf32> to vector<1x1xf32>
    %19 = math.log %18 : vector<1x1xf32>
    %20 = arith.addf %19, %13 : vector<1x1xf32>
    %21 = vector.broadcast %20 : vector<1x1xf32> to vector<1x256xf32>
    %22 = arith.subf %11, %21 : vector<1x256xf32>
    %c0_15 = arith.constant 0 : index
    %c0_16 = arith.constant 0 : index
    %23 = vector.load %arg4[%c0_15, %c0_16] : memref<1x256xf32, #tpu.memory_space<vmem>>, vector<1x256xf32>
    %24 = arith.mulf %22, %23 : vector<1x256xf32>
    %25 = vector.shape_cast %24 : vector<1x256xf32> to vector<1x1x256xf32>
    %cst_17 = arith.constant dense<0.000000e+00> : vector<1xf32>
    %26 = vector.multi_reduction <add>, %25, %cst_17 [1, 2] : vector<1x1x256xf32> to vector<1xf32>
    %27 = vector.shape_cast %26 : vector<1xf32> to vector<1x1x1xf32>
    %28 = vector.extract %27[0, 0, 0] : f32 from vector<1x1x1xf32>
    %cst_18 = arith.constant 0.000000e+00 : f32
    %29 = arith.subf %cst_18, %28 : f32
    %c0_19 = arith.constant 0 : index
    %c0_20 = arith.constant 0 : index
    %30 = memref.load %arg7[%c0_19, %c0_20] : memref<1x1xf32, #tpu.memory_space<smem>>
    memref.store %29, %arg7[%c0_19, %c0_20] : memref<1x1xf32, #tpu.memory_space<smem>>
    return
  }
}

</mosaic_0001>

<bundles_post_ra>
// kernel: basic_model_forward.1
= control target key start
LH: loop header
LB: loop body
LE: loop exit
PB: predicated region body
PF: predicated region fallthrough
CT: control target
= control target key end

     0   :  { %13 = vsyncpa [#allocation3], 0  ;;  %s844_s0 = inlined_call_operand.vmem [shape: f32[64,128], index: 0, kind: input, shape index: {}]   ;;  %s845_s1 = inlined_call_operand.vmem [shape: f32[128,128], index: 1, kind: input, shape index: {}]   ;;  %s846_s2 = inlined_call_operand.vmem [shape: f32[40,64], index: 2, kind: input, shape index: {}]   ;;  %s847_s3 = inlined_call_operand.vmem [shape: f32[1,256], index: 3, kind: input, shape index: {}]   ;;  %s848_s4 = inlined_call_operand.vmem [shape: f32[1,256], index: 4, kind: input, shape index: {}]   ;;  %s849_s5 = inlined_call_operand.hbm [shape: f32[32,128], index: 5, kind: output, shape index: {0}]   ;;  %s850_s6 = inlined_call_operand.hbm [shape: f32[2,128], index: 6, kind: output, shape index: {1}]   ;;  %s851_s7 = inlined_call_operand.hbm [shape: f32[1,1], index: 7, kind: output, shape index: {2}]  }
   0x1   :  { %14 = vsyncpa [#allocation6], 0  ;;  %v281_v0 = vlaneseq  ;;  %v34_v1 = vld [vmem:[%s845_s1] sm:$0xff]  ;;  %v35_v2 = vld [vmem:[%s845_s1 + $0x8] sm:$0xff]  ;;  %vm291_vm0 = vcmask 1040384  }
   0x2   :  { %v520_v3 = vpack.c.bf16 %v35_v2, %v34_v1  ;;  %v36_v4 = vld [vmem:[%s845_s1 + $0x10] sm:$0xff]  ;;  %v37_v5 = vld [vmem:[%s845_s1 + $0x18] sm:$0xff]  ;;  %v38_v8 = vld [vmem:[%s845_s1 + $0x20] sm:$0xff] }
   0x3   :  { %v282_v6 = vshrl.u32 %v281_v0, 7  ;;  %v524_v7 = vpack.c.bf16 %v37_v5, %v36_v4  ;;  %v39_v9 = vld [vmem:[%s845_s1 + $0x28] sm:$0xff]  ;;  %v707_v10 = vld [vmem:[%s847_s3] sm:$0x3]  ;;  %v40_v17 = vld [vmem:[%s845_s1 + $0x30] sm:$0xff] }
   0x4   :  { %521 = vmatprep.subr.bf16.mxu0 %v520_v3  ;;  %v528_v13 = vpack.c.bf16 %v39_v9, %v38_v8  ;;  %v26_v14 = vld [vmem:[%s844_s0] sm:$0xff]  ;;  %v41_v18 = vld [vmem:[%s845_s1 + $0x38] sm:$0xff] }
   0x5   :  { %v709_v11 = vsub.s32 0, %v282_v6  ;;  %v711_v12 = vsub.s32 1, %v282_v6  ;;  %523 = vmatpush3.bf16.msra.mxu0 %v520_v3  ;;  %477 = vmatprep.mubr.f32.mxu0 %v26_v14 }
   0x6   :  { %525 = vmatprep.subr.bf16.mxu0 %v524_v7 }
   0x7   :  { %v284_v15 = vrot.slane %v707_v10, %v709_v11  ;;  %v288_v16 = vrot.slane %v707_v10, %v711_v12 }
   0x9   :  { %v292_v19 = vsel %vm291_vm0, %v284_v15, -inf  ;;  %v293_v20 = vsel %vm291_vm0, %v288_v16, -inf  ;;  %527 = vmatpush3.bf16.msra.mxu0 %v524_v7 }
   0xa   :  { %15 = vsyncpa [#allocation4], 0  ;;  %v294_v21 = vmax.f32 %v292_v19, %v293_v20  ;;  %529 = vmatprep.subr.bf16.mxu0 %v528_v13  ;;  %v532_v22 = vpack.c.bf16 %v41_v18, %v40_v17  ;;  %v42_v23 = vld [vmem:[%s845_s1 + $0x40] sm:$0xff]  ;;  %v43_v24 = vld [vmem:[%s845_s1 + $0x48] sm:$0xff]  ;;  %v638_v42 = vmov 0.0|0.0   ;;  %vm639_vm1 = vmmov 0  }
   0xb   :  { %v536_v25 = vpack.c.bf16 %v43_v24, %v42_v23  ;;  %v44_v26 = vld [vmem:[%s845_s1 + $0x50] sm:$0xff]  ;;  %v45_v27 = vld [vmem:[%s845_s1 + $0x58] sm:$0xff]  ;;  %v46_v29 = vld [vmem:[%s845_s1 + $0x60] sm:$0xff]  ;;  %552 = vmatprep.subr.bf16.mxu1 %v638_v42  ;;  %v640_v53 = vmov 0.0   ;;  %vm168_vm2 = vcmask 523264   ;;  %s642_s13 = smov [#allocation5]  }
   0xc   :  { %295 = vmax.xlane.f32.xlu0 %v294_v21  ;;  %v540_v28 = vpack.c.bf16 %v45_v27, %v44_v26  ;;  %v47_v30 = vld [vmem:[%s845_s1 + $0x68] sm:$0xff]  ;;  %v48_v32 = vld [vmem:[%s845_s1 + $0x70] sm:$0xff]  ;;  %v49_v33 = vld [vmem:[%s845_s1 + $0x78] sm:$0xff]  ;;  %505 = vmatprep.mubr.msk.f32.mxu1 %vm639_vm1, %v640_v53  ;;  %s378_s14 = sshll.u32 %s642_s13, 4  ;;  %s379_s14 = int_to_ptr.vmem [resolvable:$true] %s378_s14 }
   0xd   :  { %531 = vmatpush3.bf16.msra.mxu0 %v528_v13  ;;  %v544_v31 = vpack.c.bf16 %v47_v30, %v46_v29  ;;  %v548_v34 = vpack.c.bf16 %v49_v33, %v48_v32  ;;  %v27_v35 = vld [vmem:[%s844_s0 + $0x8] sm:$0xff]  ;;  %v28_v36 = vld [vmem:[%s844_s0 + $0x10] sm:$0xff]  ;;  %v29_v37 = vld [vmem:[%s844_s0 + $0x18] sm:$0xff] }
   0xe   :  { %533 = vmatprep.subr.bf16.mxu0 %v532_v22  ;;  %v30_v38 = vld [vmem:[%s844_s0 + $0x20] sm:$0xff]  ;;  %v31_v39 = vld [vmem:[%s844_s0 + $0x28] sm:$0xff]  ;;  %v32_v40 = vld [vmem:[%s844_s0 + $0x30] sm:$0xff] }
   0xf   :  { %v33_v41 = vld [vmem:[%s844_s0 + $0x38] sm:$0xff]  ;;  %v163_v13 = vld [vmem:[%s846_s2] sm:$0xff]  ;;  %v164_v14 = vld [vmem:[%s846_s2 + $0x8] sm:$0xff] }
  0x10   :  { %v165_v15 = vld [vmem:[%s846_s2 + $0x10] sm:$0xff]  ;;  %v166_v16 = vld [vmem:[%s846_s2 + $0x18] sm:$0xff]  ;;  %v167_v17 = vld [vmem:[%s846_s2 + $0x20] sm:$0xff]  ;;  %s641_s2 = smov [#allocation2]  }
  0x11   :  { %535 = vmatpush3.bf16.msra.mxu0 %v532_v22  ;;  %v332_v23 = vld [vmem:[%s848_s4] sm:$0x3]  ;;  %s365_s4 = sshll.u32 %s641_s2, 4  ;;  %s366_s4 = int_to_ptr.vmem [resolvable:$true] %s365_s4 }
  0x12   :  { %537 = vmatprep.subr.bf16.mxu0 %v536_v25  ;;  %s578_s15 = scalar_lea.vmem %s366_s4, 512  ;;  %p583_p1 = scmp.lt.s32.totalorder %s366_s4, %s366_s4 }
  0x13   :  { %p579_p0 = scmp.ne.s32.totalorder %s366_s4, %s578_s15  ;;  %p584_p2 = scmp.lt.s32.totalorder %s578_s15, %s578_s15 }
  0x15   :  { %539 = vmatpush3.bf16.msra.mxu0 %v536_v25  ;;  %p585_p3 = por %p584_p2, %p583_p1 }
  0x16   :  { %541 = vmatprep.subr.bf16.mxu0 %v540_v28 }
  0x17   :  { %p586_p4 = pnand %p585_p3, %p579_p0 }
  0x19   :  { %543 = vmatpush3.bf16.msra.mxu0 %v540_v28 }
  0x1a   :  { %545 = vmatprep.subr.bf16.mxu0 %v544_v31 }
  0x1d   :  { %547 = vmatpush3.bf16.msra.mxu0 %v544_v31 }
  0x1e   :  { %549 = vmatprep.subr.bf16.mxu0 %v548_v34 }
  0x21   :  { %551 = vmatpush3.bf16.msra.mxu0 %v548_v34 }
  0x24   :  { %478 = vmatmul.mubr.f32.vlgmr.msra.gmra.mrb[0].mxu0 %v27_v35 }
  0x25   :  { %480 = vmatprep.mubr.f32.mxu0 %v28_v36 }
  0x28   :  { %481 = vmatmul.mubr.f32.gmra.mrb[2].mxu0 %v29_v37 }
  0x29   :  { %483 = vmatprep.mubr.f32.mxu0 %v30_v38 }
  0x2c   :  { %484 = vmatmul.mubr.f32.gmra.mrb[4].mxu0 %v31_v39 }
  0x2d   :  { %486 = vmatprep.mubr.f32.mxu0 %v32_v40 }
  0x30   :  { %487 = vmatmul.mubr.f32.gmra.mrb[6].mxu0 %v33_v41 }
  0x99   :  { %v296_v43 = vpop.xlane.xlu0 %295 }
  0x9a   :  { %v301_v44 = vrot.slane %v296_v43, %v709_v11 }
  0x9c   :  { %v303_v45 = vsub.f32 %v707_v10, %v301_v44 }
  0x9e   :  { %v304_v46 = vmul.f32 1.442695, %v303_v45 }
  0xa0   :  { %574 = vpow2.f32 %v304_v46 }
  0xaa   :  { %v575_v47 = vpop.eup %574 }
  0xab   :  { %v310_v48 = vrot.slane %v575_v47, %v709_v11  ;;  %v314_v49 = vrot.slane %v575_v47, %v711_v12 }
  0xad   :  { %v317_v50 = vsel %vm291_vm0, %v310_v48, 0.0  ;;  %v318_v51 = vsel %vm291_vm0, %v314_v49, 0.0 }
  0xae   :  { %v319_v52 = vadd.f32 %v318_v51, %v317_v50 }
  0xb0   :  { %320 = vadd.xlane.f32.xlu0 %v319_v52 }
  0xf7   :  { %v479_v54 = vpop.f32.mrb[0].mxu0 }
  0xf8   :  { %v156_v55 = vmax.f32 %v479_v54, 0.0  ;;  %v116_v56 = vpop.f32.mrb[1].mxu0 }
  0xf9   :  { %v155_v57 = vmax.f32 %v116_v56, 0.0 }
  0xfb   :  { %v482_v58 = vpop.f32.mrb[2].mxu0  ;;  %v553_v59 = vpack.c.bf16 %v156_v55, %v155_v57 }
  0xfc   :  { %v158_v60 = vmax.f32 %v482_v58, 0.0  ;;  %v126_v61 = vpop.f32.mrb[3].mxu0 }
  0xfd   :  { %v157_v62 = vmax.f32 %v126_v61, 0.0  ;;  %554 = vmatpush3.bf16.msra.mxu1 %v553_v59 }
  0xfe   :  { %555 = vmatprep.subr.bf16.mxu1 %v638_v42 }
  0xff   :  { %v556_v63 = vpack.c.bf16 %v158_v60, %v157_v62  ;;  %v485_v0 = vpop.f32.mrb[4].mxu0 }
 0x100   :  { %v160_v1 = vmax.f32 %v485_v0, 0.0  ;;  %v136_v2 = vpop.f32.mrb[5].mxu0 }
 0x101   :  { %v159_v3 = vmax.f32 %v136_v2, 0.0  ;;  %557 = vmatpush3.bf16.msra.mxu1 %v556_v63 }
 0x102   :  { %558 = vmatprep.subr.bf16.mxu1 %v638_v42 }
 0x103   :  { %v559_v4 = vpack.c.bf16 %v160_v1, %v159_v3  ;;  %v488_v5 = vpop.f32.mrb[6].mxu0 }
 0x104   :  { %v162_v6 = vmax.f32 %v488_v5, 0.0  ;;  %v146_v7 = vpop.f32.mrb[7].mxu0 }
 0x105   :  { %v161_v8 = vmax.f32 %v146_v7, 0.0  ;;  %560 = vmatpush3.bf16.msra.mxu1 %v559_v4 }
 0x106   :  { %561 = vmatprep.subr.bf16.mxu1 %v638_v42 }
 0x107   :  { %v562_v9 = vpack.c.bf16 %v162_v6, %v161_v8 }
 0x109   :  { %563 = vmatpush3.bf16.msra.mxu1 %v562_v9 }
 0x10c   :  { %506 = vmatmul.mubr.msk.f32.vlgmr.msra.gmra.mrb[0].mxu1 %vm168_vm2, %v163_v13 }
 0x10d   :  { %508 = vmatprep.mubr.msk.f32.mxu1 %vm639_vm1, %v640_v53 }
 0x110   :  { %509 = vmatmul.mubr.msk.f32.gmra.mrb[2].mxu1 %vm168_vm2, %v164_v14 }
 0x111   :  { %511 = vmatprep.mubr.msk.f32.mxu1 %vm639_vm1, %v640_v53 }
 0x114   :  { %512 = vmatmul.mubr.msk.f32.gmra.mrb[4].mxu1 %vm168_vm2, %v165_v15 }
 0x115   :  { %514 = vmatprep.mubr.msk.f32.mxu1 %vm639_vm1, %v640_v53 }
 0x118   :  { %515 = vmatmul.mubr.msk.f32.gmra.mrb[6].mxu1 %vm168_vm2, %v166_v16 }
 0x119   :  { %517 = vmatprep.mubr.msk.f32.mxu1 %vm639_vm1, %v640_v53 }
 0x11c   :  { %518 = vmatmul.mubr.msk.f32.gmra.mrb[8].mxu1 %vm168_vm2, %v167_v17 }
 0x13d   :  { %v321_v18 = vpop.xlane.xlu0 %320 }
 0x13e   :  { %576 = vlog2.f32 %v321_v18 }
 0x148   :  { %v577_v19 = vpop.eup %576 }
 0x149   :  { %v323_v20 = vmul.f32 0.6931472, %v577_v19 }
 0x14b   :  { %v324_v21 = vadd.f32 %v323_v20, %v296_v43 }
 0x14d   :  { %v329_v22 = vrot.slane %v324_v21, %v709_v11 }
 0x14f   :  { %v331_v24 = vsub.f32 %v707_v10, %v329_v22 }
 0x151   :  { %v333_v25 = vmul.f32 %v332_v23, %v331_v24 }
 0x153   :  { %v338_v26 = vrot.slane %v333_v25, %v709_v11  ;;  %v342_v27 = vrot.slane %v333_v25, %v711_v12 }
 0x155   :  { %v345_v28 = vsel %vm291_vm0, %v338_v26, 0.0  ;;  %v346_v29 = vsel %vm291_vm0, %v342_v27, 0.0 }
 0x156   :  { %v347_v30 = vadd.f32 %v346_v29, %v345_v28 }
 0x158   :  { %348 = vadd.xlane.f32.xlu1 %v347_v30 }
 0x1df   :  { %v250_v31 = vpop.f32.mrb[0].mxu1 }
 0x1e0   :  { %274 = vst [vmem:[#allocation2] sm:$0xff] %v250_v31  ;;  %v507_v32 = vpop.f32.mrb[1].mxu1 }
 0x1e3   :  { %v255_v33 = vpop.f32.mrb[2].mxu1 }
 0x1e4   :  { %275 = vst [vmem:[#allocation2 + $0x8] sm:$0xff] %v255_v33  ;;  %v510_v34 = vpop.f32.mrb[3].mxu1 }
 0x1e5   :  { %v349_v35 = vpop.xlane.xlu1 %348 }
 0x1e6   :  { %v350_v36 = vrot.slane %v349_v35, 4 }
 0x1e7   :  { %v260_v10 = vpop.f32.mrb[4].mxu1 }
 0x1e8   :  { %v351_v11 = vadd.f32 %v350_v36, %v349_v35  ;;  %276 = vst [vmem:[#allocation2 + $0x10] sm:$0xff] %v260_v10  ;;  %v513_v12 = vpop.f32.mrb[5].mxu1 }
 0x1ea   :  { %v352_v37 = vrot.slane %v351_v11, 2 }
 0x1eb   :  { %v265_v38 = vpop.f32.mrb[6].mxu1 }
 0x1ec   :  { %v353_v39 = vadd.f32 %v352_v37, %v351_v11  ;;  %277 = vst [vmem:[#allocation2 + $0x18] sm:$0xff] %v265_v38  ;;  %v516_v40 = vpop.f32.mrb[7].mxu1 }
 0x1ed   :  { %589 = shalt.err (!%p586_p4)
}
 0x1ee   :  { %s590_s17 = scalar_lea.hbm %s849_s5, 512 }
 0x1ef   :  { %p591_p5 = scmp.ne.s32.totalorder %s849_s5, %s590_s17  ;;  %p594_p6 = scmp.lt.u32.totalorder %s590_s17, %s849_s5 }
 0x1f1   :  { %p596_p7 = pnand %p594_p6, %p591_p5 }
 0x1f3   :  { %599 = shalt.err (!%p596_p7)
}
 0x1f4   :  { %s643_s21 = smov 128   ;;  %s644_s22 = smov 8   ;;  %v354_v41 = vrot.slane %v353_v39, 1  ;;  %v270_v42 = vpop.f32.mrb[8].mxu1 }
 0x1f5   :  { %371 = dma.vmem_to_hbm [thread:$0]  %s366_s4, 512, %s849_s5, [#allocation3], %s643_s21, %s643_s21, %s644_s22   ;;  %278 = vst [vmem:[#allocation5] sm:$0x3] %v270_v42  ;;  %v519_v44 = vpop.f32.mrb[9].mxu1 }
 0x1f6   :  { %v355_v43 = vadd.f32 %v354_v41, %v353_v39  ;;  %s600_s0 = scalar_lea.vmem %s379_s14, 32  ;;  %p605_p9 = scmp.lt.s32.totalorder %s379_s14, %s379_s14 }
 0x1f7   :  { %p601_p8 = scmp.ne.s32.totalorder %s379_s14, %s600_s0  ;;  %p606_p10 = scmp.lt.s32.totalorder %s600_s0, %s600_s0 }
 0x1f9   :  { %p607_p11 = por %p606_p10, %p605_p9 }
 0x1fb   :  { %p608_p12 = pnand %p607_p11, %p601_p8 }
 0x1fd   :  { %611 = shalt.err (!%p608_p12)
}
 0x1fe   :  { %s612_s27 = scalar_lea.hbm %s850_s6, 32 }
 0x1ff   :  { %p613_p13 = scmp.ne.s32.totalorder %s850_s6, %s612_s27  ;;  %p616_p0 = scmp.lt.u32.totalorder %s612_s27, %s850_s6 }
 0x201   :  { %p618_p1 = pnand %p616_p0, %p613_p13 }
 0x203   :  { %621 = shalt.err (!%p618_p1)
}
 0x204   :  { %381 = dma.vmem_to_hbm [thread:$0]  %s379_s14, 32, %s850_s6, [#allocation6]   ;;  %564 = vpush %v355_v43 }
 0x205   :  { %s622_s4 = scalar_lea.hbm %s851_s7, 16 }
 0x206   :  { %p623_p2 = scmp.ne.s32.totalorder %s851_s7, %s622_s4  ;;  %p626_p3 = scmp.lt.u32.totalorder %s622_s4, %s851_s7 }
 0x208   :  { %p628_p4 = pnand %p626_p3, %p623_p2 }
 0x235   :  { %s565_s10 = spop %564 }
 0x236   :  { %s357_s11 = ssub.f32 0.0, %s565_s10 }
 0x238   :  { %359 = sst [smem:[#allocation7]] %s357_s11 }
 0x239   :  { %631 = shalt.err (!%p628_p4)
}
 0x23a   :  { %s645_s17 = smov [#allocation7]  }
 0x23b   :  { %389 = dma.smem_to_hbm %s645_s17, 16, %s851_s7, [#allocation4]  }
 0x23c   :  { %632 = dma.done.wait [#allocation3], 512  }
 0x23d   :  { %633 = vsyncadd [#allocation3], 4294966784 }
 0x23e   :  { %634 = dma.done.wait [#allocation6], 32  }
 0x23f   :  { %635 = vsyncadd [#allocation6], 4294967264 }
 0x240   :  { %636 = dma.done.wait [#allocation4], 16  }
 0x241   :  { %637 = vsyncadd [#allocation4], 4294967280 }
 0x242   :  { %399 = sfence }
 0x243   :  { %400 = vsyncpa [#allocation3], 1 }
 0x244   :  { %401 = vsyncpa [#allocation6], 1 }
 0x245   :  { %402 = vsyncpa [#allocation4], 1 }

</bundles_post_ra>
